<compile_context>
chip_gen: v7x
topology: tpu7x:2x2x1
jax: 0.10.0
libtpu: 0.0.40
codegen_flags: <defaults>
</compile_context>

<pallas_src>
import functools

import jax
import jax.numpy as jnp
from jax.experimental import pallas as pl
from jax.experimental.pallas import tpu as pltpu


# ----------------------------------------------------------------------------
# helpers
# ----------------------------------------------------------------------------
def _round_up(x, m):
    return ((x + m - 1) // m) * m


def _pad2(a, rows, cols):
    pr, pc = rows - a.shape[0], cols - a.shape[1]
    if pr or pc:
        a = jnp.pad(a, ((0, pr), (0, pc)))
    return a


def _vmem_capacity_bytes():
    """Best-effort per-TensorCore VMEM capacity (bytes)."""
    try:
        cap = int(pltpu.get_tpu_info().vmem_capacity_bytes)
        if cap > 0:
            return cap
    except Exception:
        pass
    kind = ""
    try:
        kind = jax.devices()[0].device_kind.lower()
    except Exception:
        pass
    if "v7" in kind:
        return 64 * 1024 * 1024
    return 128 * 1024 * 1024


def _choose_nk_tiles(d, v, vmem_bytes, block_n=None, block_k=None):
    big_vmem = vmem_bytes >= 96 * 1024 * 1024          # v5e / v6e class
    tgt_n = 2048 if big_vmem else 1024                 # v7x: cap at 1024
    tgt_k = 512
    tn = block_n if block_n is not None else min(tgt_n, _round_up(v, 128))
    tk = block_k if block_k is not None else min(tgt_k, _round_up(d, 128))
    return tn, tk


def _choose_m_tile(n, block_m=None, want_two_blocks=False):
    if block_m is not None:
        return block_m
    tm = min(1024, _round_up(n, 16))
    if want_two_blocks and n > 16:
        # v7x: 2 TensorCores shard the "parallel" i axis -> give both cores work.
        tm = min(tm, _round_up(-(-n // 2), 16))
    return tm


def _vmem_limit_bytes(footprint, capacity):
    want = footprint + footprint // 4 + (8 << 20)      # 25% + 8 MiB headroom
    cap = capacity - (8 << 20)                         # never request all of VMEM
    return int(max(min(want, cap), min(32 << 20, cap)))


def _footprint_linear(tm, tn, tk, out_itemsize, use_acc):
    f = 2 * (tm * tk * 2)                  # x tile, bf16, double-buffered
    f += 2 * (tk * tn * 2)                 # W tile, bf16, double-buffered
    f += 2 * (tn * 4)                      # bias tile
    f += 2 * (tm * tn * out_itemsize)      # output tile, double-buffered
    if use_acc:
        f += tm * tn * 4
    return f


def _footprint_fused(tm, tn, tk):
    f = 2 * (tm * tk * 2) + 2 * (tk * tn * 2) + 2 * (tn * 4)
    f += 2 * (tm * 4)                      # targets
    f += 2 * (tm * 4)                      # per-row loss output
    f += tm * tn * 4                       # matmul accumulator
    f += 3 * tm * 4                        # m / l / target-logit state
    return f


# ----------------------------------------------------------------------------
# Kernel 1: tiled Linear  (logits = x @ W^T + b)
# ----------------------------------------------------------------------------
def _linear_kernel_f32(x_ref, w_ref, b_ref, o_ref):
    # f32 output: accumulate directly into the resident output block (no scratch,
    # no final copy).
    @pl.when(pl.program_id(2) == 0)
    def _init():
        o_ref[...] = jnp.zeros_like(o_ref) + b_ref[...]

    o_ref[...] += jnp.dot(x_ref[...], w_ref[...], preferred_element_type=jnp.float32)


def _linear_kernel_acc(x_ref, w_ref, b_ref, o_ref, acc_ref):
    # Narrow output dtype: keep the f32 accumulator scratch, cast on final store.
    k = pl.program_id(2)

    @pl.when(k == 0)
    def _init():
        acc_ref[...] = jnp.zeros_like(acc_ref)

    acc_ref[...] += jnp.dot(x_ref[...], w_ref[...], preferred_element_type=jnp.float32)

    @pl.when(k == pl.num_programs(2) - 1)
    def _store():
        o_ref[...] = (acc_ref[...] + b_ref[...]).astype(o_ref.dtype)


def _linear_padded(x_p, w_p, b_p, *, tm, tn, tk, out_dtype, vmem_capacity):
    """x_p: (n_p, d_p) bf16, w_p: (d_p, v_p) bf16, b_p: (1, v_p) f32 -> (n_p, v_p)."""
    n_p, d_p = x_p.shape
    v_p = w_p.shape[1]
    grid = (n_p // tm, v_p // tn, d_p // tk)

    use_acc = jnp.dtype(out_dtype) != jnp.dtype(jnp.float32)
    kernel = _linear_kernel_acc if use_acc else _linear_kernel_f32
    scratch = [pltpu.VMEM((tm, tn), jnp.float32)] if use_acc else []
    out_itemsize = jnp.dtype(out_dtype).itemsize

    cost = pl.CostEstimate(
        flops=2 * n_p * d_p * v_p,
        transcendentals=0,
        bytes_accessed=(n_p * d_p + d_p * v_p) * 2 + v_p * 4 + n_p * v_p * out_itemsize,
    )
    limit = _vmem_limit_bytes(_footprint_linear(tm, tn, tk, out_itemsize, use_acc),
                              vmem_capacity)

    return pl.pallas_call(
        kernel,
        out_shape=jax.ShapeDtypeStruct((n_p, v_p), out_dtype),
        grid_spec=pltpu.PrefetchScalarGridSpec(
            num_scalar_prefetch=0,
            grid=grid,
            in_specs=[
                pl.BlockSpec((tm, tk), lambda i, j, k: (i, k)),
                pl.BlockSpec((tk, tn), lambda i, j, k: (k, j)),
                pl.BlockSpec((1, tn), lambda i, j, k: (0, j)),
            ],
            out_specs=pl.BlockSpec((tm, tn), lambda i, j, k: (i, j)),
            scratch_shapes=scratch,
        ),
        compiler_params=pltpu.CompilerParams(
            dimension_semantics=("parallel", "parallel", "arbitrary"),
            vmem_limit_bytes=limit,
        ),
        cost_estimate=cost,
    )(x_p, w_p, b_p)


# ----------------------------------------------------------------------------
# Kernel 2: fused Linear + CrossEntropyLoss(reduction='sum', ignore_index)
#   online logsumexp over the vocab-tile axis; (N,V) logits never leave VMEM.
# ----------------------------------------------------------------------------
def _fused_linear_ce_kernel(x_ref, w_ref, b_ref, tgt_ref, loss_ref,
                            acc_ref, m_ref, l_ref, tl_ref, *, ignore_index):
    j = pl.program_id(1)           # vocab tile
    k = pl.program_id(2)           # contraction tile
    nj = pl.num_programs(1)
    nk = pl.num_programs(2)

    # Re-init online-softmax state at the first (j,k) step of each i tile.
    # (Relies on row-major grid order: i outermost, k innermost — the standard
    #  Pallas TPU order; per-core scratch keeps this correct under megacore.)
    @pl.when(jnp.logical_and(j == 0, k == 0))
    def _init_state():
        m_ref[...] = jnp.full_like(m_ref, -1e30)
        l_ref[...] = jnp.zeros_like(l_ref)
        tl_ref[...] = jnp.zeros_like(tl_ref)

    @pl.when(k == 0)
    def _init_acc():
        acc_ref[...] = jnp.zeros_like(acc_ref)

    acc_ref[...] += jnp.dot(x_ref[...], w_ref[...], preferred_element_type=jnp.float32)

    @pl.when(k == nk - 1)
    def _online_softmax():
        # Padded vocab columns need no explicit mask: padded W columns are zero and
        # the bias there was pre-set to -1e30, so s is already -1e30 for them.
        s = acc_ref[...] + b_ref[...]                                   # (tm, tn) f32
        tn = s.shape[1]

        m_prev = m_ref[...]
        m_new = jnp.maximum(m_prev, jnp.max(s, axis=-1, keepdims=True))
        alpha = jnp.exp(m_prev - m_new)
        l_ref[...] = alpha * l_ref[...] + jnp.sum(jnp.exp(s - m_new),
                                                  axis=-1, keepdims=True)
        m_ref[...] = m_new

        # Target-logit gather: local lane index vs (target - j*tn).
        tgt = tgt_ref[...]                                              # (tm, 1) int32
        lane = jax.lax.broadcasted_iota(jnp.int32, s.shape, 1)
        hit = lane == (tgt - j * tn)
        tl_ref[...] += jnp.sum(jnp.where(hit, s, 0.0), axis=-1, keepdims=True)

        @pl.when(j == nj - 1)
        def _finalize():
            valid = (tgt != ignore_index).astype(jnp.float32)
            lse = m_ref[...] + jnp.log(l_ref[...])
            loss_ref[...] = valid * (lse - tl_ref[...])                 # per-row loss


def _fused_ce_padded(x_p, w_p, b_p, tgt_p, *, tm, tn, tk, ignore_index, vmem_capacity):
    n_p, d_p = x_p.shape
    v_p = w_p.shape[1]
    grid = (n_p // tm, v_p // tn, d_p // tk)

    cost = pl.CostEstimate(
        flops=2 * n_p * d_p * v_p + 6 * n_p * v_p,
        transcendentals=n_p * v_p,
        bytes_accessed=(n_p * d_p + d_p * v_p) * 2 + v_p * 4 + n_p * 8,
    )
    limit = _vmem_limit_bytes(_footprint_fused(tm, tn, tk), vmem_capacity)

    kern = functools.partial(_fused_linear_ce_kernel, ignore_index=int(ignore_index))

    per_row = pl.pallas_call(
        kern,
        out_shape=jax.ShapeDtypeStruct((n_p, 1), jnp.float32),
        grid_spec=pltpu.PrefetchScalarGridSpec(
            num_scalar_prefetch=0,
            grid=grid,
            in_specs=[
                pl.BlockSpec((tm, tk), lambda i, j, k: (i, k)),
                pl.BlockSpec((tk, tn), lambda i, j, k: (k, j)),
                pl.BlockSpec((1, tn), lambda i, j, k: (0, j)),
                pl.BlockSpec((tm, 1), lambda i, j, k: (i, 0)),
            ],
            out_specs=pl.BlockSpec((tm, 1), lambda i, j, k: (i, 0)),
            scratch_shapes=[
                pltpu.VMEM((tm, tn), jnp.float32),   # matmul accumulator
                pltpu.VMEM((tm, 1), jnp.float32),    # running max m
                pltpu.VMEM((tm, 1), jnp.float32),    # running sum l
                pltpu.VMEM((tm, 1), jnp.float32),    # gathered target logit
            ],
        ),
        compiler_params=pltpu.CompilerParams(
            dimension_semantics=("parallel", "arbitrary", "arbitrary"),
            vmem_limit_bytes=limit,
        ),
        cost_estimate=cost,
    )(x_p, w_p, b_p, tgt_p)
    # tiny (N,1) reduction; padded / ignored rows are exactly 0.
    return per_row


# ----------------------------------------------------------------------------
# Module-equivalent wrapper
# ----------------------------------------------------------------------------
class WordPredictor:
    def __init__(self, inputDim, outputDim, ignoreIndex=-1, key=None,
                 zero_init=True, out_dtype=jnp.float32,
                 block_m=None, block_n=None, block_k=None):
        self.inputDim, self.outputDim = inputDim, outputDim
        self.ignoreIndex = int(ignoreIndex)
        self.out_dtype = out_dtype          # set to jnp.bfloat16 on v5e/v6e to halve logit writes
        self._block_m = block_m

        self._vmem = _vmem_capacity_bytes()
        self._dual_tc = self._vmem < 96 * 1024 * 1024   # v7x-class (2 TensorCores)

        if zero_init:
            # matches the PyTorch module's initWeight() (all-zero weight & bias)
            self.weight = jnp.zeros((outputDim, inputDim), jnp.float32)
            self.bias = jnp.zeros((outputDim,), jnp.float32)
        else:
            if key is None:
                key = jax.random.PRNGKey(0)
            kw, kb = jax.random.split(key)
            self.weight = jax.random.normal(kw, (outputDim, inputDim), jnp.float32) * 0.05
            self.bias = jax.random.normal(kb, (outputDim,), jnp.float32) * 0.05

        # --- pre-pad + pre-cast MXU operands ONCE (no per-call weight pass) ---
        self._tn, self._tk = _choose_nk_tiles(inputDim, outputDim, self._vmem,
                                              block_n, block_k)
        self._d_p = _round_up(inputDim, self._tk)
        self._v_p = _round_up(outputDim, self._tn)
        self._w_p = _pad2(jnp.asarray(self.weight).T,
                          self._d_p, self._v_p).astype(jnp.bfloat16)
        b2 = jnp.asarray(self.bias, jnp.float32).reshape(1, outputDim)
        self._b_lin = _pad2(b2, 1, self._v_p)            # zero-padded (sliced off later)
        if self._v_p != outputDim:
            # -1e30 in padded columns masks them "for free" in the fused CE kernel.
            self._b_ce = jnp.concatenate(
                [b2, jnp.full((1, self._v_p - outputDim), -1e30, jnp.float32)], axis=1)
        else:
            self._b_ce = b2

    def __call__(self, x, target=None):
        n, d = x.shape
        assert d == self.inputDim, "input feature dim mismatch"

        tm = _choose_m_tile(n, self._block_m,
                            want_two_blocks=(self._dual_tc and target is not None))
        n_p = _round_up(n, tm)
        x_p = _pad2(x, n_p, self._d_p).astype(jnp.bfloat16)

        if target is None:
            out = _linear_padded(x_p, self._w_p, self._b_lin,
                                 tm=tm, tn=self._tn, tk=self._tk,
                                 out_dtype=self.out_dtype, vmem_capacity=self._vmem)
            if (n_p, self._v_p) != (n, self.outputDim):
                # Only sliced when padding actually happened; tile-aligned V avoids it.
                out = out[:n, :self.outputDim]
            return out

        tgt_p = jnp.full((n_p,), jnp.int32(self.ignoreIndex), jnp.int32)
        tgt_p = tgt_p.at[:n].set(target.astype(jnp.int32)).reshape(n_p, 1)
        per_row = _fused_ce_padded(x_p, self._w_p, self._b_ce, tgt_p,
                                   tm=tm, tn=self._tn, tk=self._tk,
                                   ignore_index=self.ignoreIndex,
                                   vmem_capacity=self._vmem)
        return jnp.sum(per_row)


# ----------------------------------------------------------------------------
# Pure-JAX reference (bf16-rounded operands to match the MXU compute dtype)
# ----------------------------------------------------------------------------
def _ref_forward(x, w, b, target, ignore_index):
    xc = x.astype(jnp.bfloat16).astype(jnp.float32)
    wc = w.astype(jnp.bfloat16).astype(jnp.float32)
    logits = xc @ wc.T + b
    if target is None:
        return logits
    lse = jax.nn.logsumexp(logits, axis=-1)
    tgt_logit = jnp.take_along_axis(
        logits, jnp.clip(target, 0, logits.shape[1] - 1)[:, None], axis=1)[:, 0]
    valid = (target != ignore_index).astype(jnp.float32)
    return jnp.sum(valid * (lse - tgt_logit))


if __name__ == "__main__":
    # Small, non-aligned shapes so padding + the (i, j, k) grid plumbing is exercised.
    N, D, V = 20, 200, 300
    key = jax.random.PRNGKey(0)
    kx, kt, kp = jax.random.split(key, 3)

    x = jax.random.normal(kx, (N, D), jnp.float32)
    target = jax.random.randint(kt, (N,), 0, V, jnp.int32)
    target = target.at[3].set(-1).at[11].set(-1)   # exercise ignore_index

    # random-weight model (zero_init=False so the math is non-trivial)
    model = WordPredictor(D, V, ignoreIndex=-1, key=kp, zero_init=False)

    # inference path (returns logits)
    logits = jax.block_until_ready(model(x))

    # training path (returns summed cross-entropy loss, fused kernel)
    loss = jax.block_until_ready(model(x, target))

    # sanity checks vs. pure-JAX reference
    ref_logits = _ref_forward(x, model.weight, model.bias, None, -1)
    ref_loss = _ref_forward(x, model.weight, model.bias, target, -1)
    assert logits.shape == (N, V) and logits.dtype == jnp.float32
    assert jnp.allclose(logits, ref_logits, atol=2e-3, rtol=2e-3), "logits mismatch"
    assert jnp.allclose(loss, ref_loss, atol=5e-2, rtol=1e-3), "loss mismatch"

    # default (PyTorch-matching) zero-init module: loss = n_valid * log(V)
    model0 = WordPredictor(D, V, ignoreIndex=-1)
    loss0 = jax.block_until_ready(model0(x, target))
    n_valid = int(jnp.sum(target != -1))
    assert jnp.allclose(loss0, n_valid * jnp.log(float(V)), atol=1e-2), "zero-init loss mismatch"

    print("KERNEL_OK")
</pallas_src>

<mosaic_0001>
module attributes {stable_mosaic.version = 11 : i64} {
  func.func @_linear_kernel_f32(%arg0: i32, %arg1: i32, %arg2: i32, %arg3: memref<32x256xbf16, #tpu.memory_space<vmem>>, %arg4: memref<256x384xbf16, #tpu.memory_space<vmem>>, %arg5: memref<1x384xf32, #tpu.memory_space<vmem>>, %arg6: memref<32x384xf32, #tpu.memory_space<vmem>>) attributes {dimension_semantics = [#tpu.dimension_semantics<parallel>, #tpu.dimension_semantics<parallel>, #tpu.dimension_semantics<arbitrary>], iteration_bounds = array<i64: 1, 1, 1>, scalar_prefetch = 0 : i64, scratch_operands = 0 : i64, tpu.core_type = #tpu.core_type<tc>, window_params = [{transform_indices = @transform_0, window_bounds = array<i64: 32, 256>}, {transform_indices = @transform_1, window_bounds = array<i64: 256, 384>}, {transform_indices = @transform_2, window_bounds = array<i64: 1, 384>}, {transform_indices = @transform_3, window_bounds = array<i64: 32, 384>}]} {
    %c0_i32 = arith.constant 0 : i32
    %0 = arith.cmpi eq, %arg2, %c0_i32 : i32
    %1 = arith.extui %0 : i1 to i32
    %c0_i32_0 = arith.constant 0 : i32
    %2 = arith.cmpi ne, %1, %c0_i32_0 : i32
    scf.if %2 {
      %cst_8 = arith.constant 0.000000e+00 : f32
      %9 = vector.broadcast %cst_8 : f32 to vector<32x384xf32>
      %c0_9 = arith.constant 0 : index
      %c0_10 = arith.constant 0 : index
      %10 = vector.load %arg5[%c0_9, %c0_10] : memref<1x384xf32, #tpu.memory_space<vmem>>, vector<1x384xf32>
      %11 = vector.broadcast %10 : vector<1x384xf32> to vector<32x384xf32>
      %12 = arith.addf %9, %11 : vector<32x384xf32>
      %c0_11 = arith.constant 0 : index
      %c0_12 = arith.constant 0 : index
      %13 = vector.load %arg6[%c0_11, %c0_12] : memref<32x384xf32, #tpu.memory_space<vmem>>, vector<32x384xf32>
      tpu.vector_store %arg6[%c0_11, %c0_12], %12 {strides = array<i32>} : memref<32x384xf32, #tpu.memory_space<vmem>>, vector<32x384xf32>,
    } else {
    }
    %c0 = arith.constant 0 : index
    %c0_1 = arith.constant 0 : index
    %3 = vector.load %arg6[%c0, %c0_1] : memref<32x384xf32, #tpu.memory_space<vmem>>, vector<32x384xf32>
    %c0_2 = arith.constant 0 : index
    %c0_3 = arith.constant 0 : index
    %4 = vector.load %arg3[%c0_2, %c0_3] : memref<32x256xbf16, #tpu.memory_space<vmem>>, vector<32x256xbf16>
    %c0_4 = arith.constant 0 : index
    %c0_5 = arith.constant 0 : index
    %5 = vector.load %arg4[%c0_4, %c0_5] : memref<256x384xbf16, #tpu.memory_space<vmem>>, vector<256x384xbf16>
    %cst = arith.constant dense<0.000000e+00> : vector<32x384xf32>
    %6 = tpu.matmul %4, %5, %cst {dimension_numbers = #tpu.dot_dimension_numbers<[1], [0], [0], [1], [0, 0, 1, 1], [], []>} : vector<32x256xbf16>, vector<256x384xbf16>, vector<32x384xf32> -> vector<32x384xf32>
    %7 = arith.addf %3, %6 : vector<32x384xf32>
    %c0_6 = arith.constant 0 : index
    %c0_7 = arith.constant 0 : index
    %8 = vector.load %arg6[%c0_6, %c0_7] : memref<32x384xf32, #tpu.memory_space<vmem>>, vector<32x384xf32>
    tpu.vector_store %arg6[%c0_6, %c0_7], %7 {strides = array<i32>} : memref<32x384xf32, #tpu.memory_space<vmem>>, vector<32x384xf32>,
    return
  }
  func.func @transform_0(%arg0: i32, %arg1: i32, %arg2: i32) -> (i32, i32) {
    %c0_i32 = arith.constant 0 : i32
    return %arg0, %arg2 : i32, i32
  }
  func.func @transform_1(%arg0: i32, %arg1: i32, %arg2: i32) -> (i32, i32) {
    %c0_i32 = arith.constant 0 : i32
    return %arg2, %arg1 : i32, i32
  }
  func.func @transform_2(%arg0: i32, %arg1: i32, %arg2: i32) -> (i32, i32) {
    %c0_i32 = arith.constant 0 : i32
    %c0_i32_0 = arith.constant 0 : i32
    return %c0_i32, %arg1 : i32, i32
  }
  func.func @transform_3(%arg0: i32, %arg1: i32, %arg2: i32) -> (i32, i32) {
    %c0_i32 = arith.constant 0 : i32
    return %arg0, %arg1 : i32, i32
  }
}

</mosaic_0001>

<bundles_post_ra>
// kernel: tpu_custom_call.1
= control target key start
LH: loop header
LB: loop body
LE: loop exit
PB: predicated region body
PF: predicated region fallthrough
CT: control target
= control target key end

     0   :  { %8 = vsyncpa [#allocation3], 0  ;;  %s879_s0 = inlined_call_operand.hbm [shape: bf16[32,256], index: 0, kind: input, shape index: {}]   ;;  %s880_s1 = inlined_call_operand.hbm [shape: bf16[256,384], index: 1, kind: input, shape index: {}]   ;;  %s881_s2 = inlined_call_operand.vmem [shape: f32[1,384], index: 2, kind: input, shape index: {}]   ;;  %s882_s3 = inlined_call_operand.hbm [shape: f32[32,384], index: 3, kind: output, shape index: {}]  }
   0x1   :  { %9 = vsyncpa [#allocation6], 0 }
   0x2   :  { %10 = vsyncpa [#allocation4], 0  ;;  %s811_s12 = smov [#allocation2]   ;;  %s739_s16 = scalar_lea.hbm %s879_s0, 512 }
   0x3   :  { %s16_s13 = sshll.u32 %s811_s12, 4  ;;  %p740_p0 = scmp.ne.s32.totalorder %s879_s0, %s739_s16  ;;  %s17_s13 = int_to_ptr.vmem [resolvable:$true] %s16_s13 }
   0x4   :  { %p743_p1 = scmp.lt.u32.totalorder %s739_s16, %s879_s0 }
   0x6   :  { %p745_p2 = pnand %p743_p1, %p740_p0 }
   0x8   :  { %748 = shalt.err (!%p745_p2)
}
   0x9   :  { %s749_s21 = scalar_lea.vmem %s17_s13, 512  ;;  %p754_p4 = scmp.lt.s32.totalorder %s17_s13, %s17_s13 }
   0xa   :  { %p750_p3 = scmp.ne.s32.totalorder %s17_s13, %s749_s21  ;;  %p755_p5 = scmp.lt.s32.totalorder %s749_s21, %s749_s21 }
   0xc   :  { %p756_p6 = por %p755_p5, %p754_p4 }
   0xe   :  { %p757_p7 = pnand %p756_p6, %p750_p3 }
  0x10   :  { %760 = shalt.err (!%p757_p7)
}
  0x11   :  { %s812_s22 = smov 128   ;;  %s813_s23 = smov 8  }
  0x12   :  { %22 = dma.hbm_to_vmem [thread:$0]  %s879_s0, 512, %s17_s13, [#allocation3], %s812_s22, %s812_s22, %s813_s23  }
  0x13   :  { %s814_s26 = smov [#allocation5]   ;;  %s761_s30 = scalar_lea.hbm %s880_s1, 6144 }
  0x14   :  { %s28_s27 = sshll.u32 %s814_s26, 4  ;;  %p762_p8 = scmp.ne.s32.totalorder %s880_s1, %s761_s30  ;;  %s29_s27 = int_to_ptr.vmem [resolvable:$true] %s28_s27 }
  0x15   :  { %p765_p9 = scmp.lt.u32.totalorder %s761_s30, %s880_s1 }
  0x17   :  { %p767_p10 = pnand %p765_p9, %p762_p8 }
  0x19   :  { %770 = shalt.err (!%p767_p10)
}
  0x1a   :  { %s771_s8 = scalar_lea.vmem %s29_s27, 6144  ;;  %p776_p12 = scmp.lt.s32.totalorder %s29_s27, %s29_s27 }
  0x1b   :  { %p772_p11 = scmp.ne.s32.totalorder %s29_s27, %s771_s8  ;;  %p777_p13 = scmp.lt.s32.totalorder %s771_s8, %s771_s8 }
  0x1d   :  { %p778_p0 = por %p777_p13, %p776_p12 }
  0x1f   :  { %p779_p1 = pnand %p778_p0, %p772_p11 }
  0x21   :  { %782 = shalt.err (!%p779_p1)
}
  0x22   :  { %s815_s0 = smov 192   ;;  %s816_s9 = smov 12  }
  0x23   :  { %34 = dma.hbm_to_vmem [thread:$0]  %s880_s1, 6144, %s29_s27, [#allocation6], %s815_s0, %s815_s0, %s816_s9  }
  0x24   :  { %805 = dma.done.wait [#allocation3], 512  }
  0x25   :  { %806 = vsyncadd [#allocation3], 4294966784 }
  0x26   :  { %807 = dma.done.wait [#allocation6], 6144  }
  0x27   :  { %808 = vsyncadd [#allocation6], 4294961152  ;;  %v669_v0 = vld [vmem:[#allocation5 + $0x4] ss:$12 sps:$4 sm:$0xff]   ;;  %v671_v1 = vld [vmem:[#allocation5] ss:$12 sps:$4 sm:$0xff]   ;;  %v50_v52 = vlaneseq }
  0x28   :  { %436 = vmatprep.subr.bf16.mxu0 %v669_v0  ;;  %v672_v2 = vld [vmem:[#allocation5 + $0x1c] ss:$12 sps:$4 sm:$0xff]   ;;  %v674_v3 = vld [vmem:[#allocation5 + $0x18] ss:$12 sps:$4 sm:$0xff]   ;;  %v675_v4 = vld [vmem:[#allocation5 + $0x34] ss:$12 sps:$4 sm:$0xff]  }
  0x29   :  { %437 = vmatpush1.bf16.msra.mxu0 %v671_v1  ;;  %v677_v5 = vld [vmem:[#allocation5 + $0x30] ss:$12 sps:$4 sm:$0xff]   ;;  %v678_v6 = vld [vmem:[#allocation5 + $0x4c] ss:$12 sps:$4 sm:$0xff]   ;;  %v690_v7 = vld [vmem:[#allocation5 + $0xc8] ss:$12 sps:$4 sm:$0xff]  }
  0x2a   :  { %438 = vmatprep.subr.bf16.mxu0 %v672_v2  ;;  %v680_v8 = vld [vmem:[#allocation5 + $0x48] ss:$12 sps:$4 sm:$0xff]   ;;  %v681_v9 = vld [vmem:[#allocation5 + $0x64] ss:$12 sps:$4 sm:$0xff]   ;;  %632 = vmatprep.subr.bf16.mxu1 %v690_v7  ;;  %v695_v11 = vld [vmem:[#allocation5 + $0xe0] ss:$12 sps:$4 sm:$0xff]  }
  0x2b   :  { %v693_v10 = vld [vmem:[#allocation5 + $0x8] ss:$12 sps:$4 sm:$0xff]   ;;  %v683_v12 = vld [vmem:[#allocation5 + $0x60] ss:$12 sps:$4 sm:$0xff]   ;;  %v700_v15 = vld [vmem:[#allocation5 + $0xf8] ss:$12 sps:$4 sm:$0xff]  }
  0x2c   :  { %633 = vmatpush3.bf16.msra.mxu1 %v693_v10  ;;  %v684_v13 = vld [vmem:[#allocation5 + $0x7c] ss:$12 sps:$4 sm:$0xff]   ;;  %v698_v14 = vld [vmem:[#allocation5 + $0x20] ss:$12 sps:$4 sm:$0xff]   ;;  %v686_v16 = vld [vmem:[#allocation5 + $0x78] ss:$12 sps:$4 sm:$0xff]  }
  0x2d   :  { %439 = vmatpush1.bf16.msra.mxu0 %v674_v3  ;;  %634 = vmatprep.subr.bf16.mxu1 %v695_v11  ;;  %v703_v17 = vld [vmem:[#allocation5 + $0x38] ss:$12 sps:$4 sm:$0xff]   ;;  %v687_v18 = vld [vmem:[#allocation5 + $0x94] ss:$12 sps:$4 sm:$0xff]   ;;  %v705_v19 = vld [vmem:[#allocation5 + $0x110] ss:$12 sps:$4 sm:$0xff]  }
  0x2e   :  { %440 = vmatprep.subr.bf16.mxu0 %v675_v4  ;;  %v689_v20 = vld [vmem:[#allocation5 + $0x90] ss:$12 sps:$4 sm:$0xff]   ;;  %v710_v22 = vld [vmem:[#allocation5 + $0x128] ss:$12 sps:$4 sm:$0xff]   ;;  %v691_v23 = vld [vmem:[#allocation5 + $0xac] ss:$12 sps:$4 sm:$0xff]  }
  0x2f   :  { %v708_v21 = vld [vmem:[#allocation5 + $0x50] ss:$12 sps:$4 sm:$0xff]   ;;  %v694_v24 = vld [vmem:[#allocation5 + $0xa8] ss:$12 sps:$4 sm:$0xff]   ;;  %v715_v26 = vld [vmem:[#allocation5 + $0x140] ss:$12 sps:$4 sm:$0xff]  }
  0x30   :  { %635 = vmatpush3.bf16.msra.mxu1 %v698_v14  ;;  %v713_v25 = vld [vmem:[#allocation5 + $0x68] ss:$12 sps:$4 sm:$0xff]   ;;  %v696_v27 = vld [vmem:[#allocation5 + $0xc4] ss:$12 sps:$4 sm:$0xff]   ;;  %v699_v28 = vld [vmem:[#allocation5 + $0xc0] ss:$12 sps:$4 sm:$0xff]  }
  0x31   :  { %441 = vmatpush1.bf16.msra.mxu0 %v677_v5  ;;  %636 = vmatprep.subr.bf16.mxu1 %v700_v15  ;;  %v718_v29 = vld [vmem:[#allocation5 + $0x80] ss:$12 sps:$4 sm:$0xff]   ;;  %v720_v30 = vld [vmem:[#allocation5 + $0x158] ss:$12 sps:$4 sm:$0xff]   ;;  %v701_v31 = vld [vmem:[#allocation5 + $0xdc] ss:$12 sps:$4 sm:$0xff]  }
  0x32   :  { %442 = vmatprep.subr.bf16.mxu0 %v678_v6  ;;  %v723_v32 = vld [vmem:[#allocation5 + $0x98] ss:$12 sps:$4 sm:$0xff]   ;;  %v725_v34 = vld [vmem:[#allocation5 + $0x170] ss:$12 sps:$4 sm:$0xff]   ;;  %v706_v35 = vld [vmem:[#allocation5 + $0xf4] ss:$12 sps:$4 sm:$0xff]  }
  0x33   :  { %v704_v33 = vld [vmem:[#allocation5 + $0xd8] ss:$12 sps:$4 sm:$0xff]   ;;  %v728_v37 = vld [vmem:[#allocation5 + $0xb0] ss:$12 sps:$4 sm:$0xff]   ;;  %v730_v40 = vld [vmem:[#allocation2] ss:$8 sps:$4 sm:$0xff]  }
  0x34   :  { %637 = vmatpush3.bf16.msra.mxu1 %v703_v17  ;;  %v732_v36 = vld [vmem:[#allocation2 + $0x4] ss:$8 sps:$4 sm:$0xff]   ;;  %v709_v38 = vld [vmem:[#allocation5 + $0xf0] ss:$12 sps:$4 sm:$0xff]   ;;  %v714_v42 = vld [vmem:[#allocation5 + $0x108] ss:$12 sps:$4 sm:$0xff]  }
  0x35   :  { %443 = vmatpush1.bf16.msra.mxu0 %v680_v8  ;;  %638 = vmatprep.subr.bf16.mxu1 %v705_v19  ;;  %v711_v39 = vld [vmem:[#allocation5 + $0x10c] ss:$12 sps:$4 sm:$0xff]   ;;  %v736_v41 = vld [vmem:[#allocation2 + $0x14] ss:$8 sps:$4 sm:$0xff]   ;;  %v716_v43 = vld [vmem:[#allocation5 + $0x124] ss:$12 sps:$4 sm:$0xff]  }
  0x36   :  { %444 = vmatprep.subr.bf16.mxu0 %v681_v9  ;;  %521 = vmatprep.mubr.bf16.mxu1 %v732_v36  ;;  %v719_v44 = vld [vmem:[#allocation5 + $0x120] ss:$12 sps:$4 sm:$0xff]   ;;  %v721_v45 = vld [vmem:[#allocation5 + $0x13c] ss:$12 sps:$4 sm:$0xff]   ;;  %v738_v46 = vld [vmem:[#allocation2 + $0x10] ss:$8 sps:$4 sm:$0xff]  }
  0x37   :  { %468 = vmatprep.mubr.bf16.mxu0 %v732_v36  ;;  %v724_v47 = vld [vmem:[#allocation5 + $0x138] ss:$12 sps:$4 sm:$0xff]   ;;  %v726_v48 = vld [vmem:[#allocation5 + $0x154] ss:$12 sps:$4 sm:$0xff]   ;;  %v729_v49 = vld [vmem:[#allocation5 + $0x150] ss:$12 sps:$4 sm:$0xff]  }
  0x38   :  { %639 = vmatpush3.bf16.msra.mxu1 %v708_v21  ;;  %v733_v50 = vld [vmem:[#allocation5 + $0x16c] ss:$12 sps:$4 sm:$0xff]   ;;  %v735_v51 = vld [vmem:[#allocation5 + $0x168] ss:$12 sps:$4 sm:$0xff]   ;;  %v51_v53 = vshrl.u32 %v50_v52, 7 }
  0x39   :  { %445 = vmatpush1.bf16.msra.mxu0 %v683_v12  ;;  %640 = vmatprep.subr.bf16.mxu1 %v710_v22  ;;  %v48_v55 = vld [vmem:[%s881_s2] sm:$0x7]  ;;  %s817_s2 = smov [#allocation7]  }
  0x3a   :  { %446 = vmatprep.subr.bf16.mxu0 %v684_v13  ;;  %v60_v54 = vsub.s32 2, %v51_v53  ;;  %v52_v8 = vsub.s32 0, %v51_v53  ;;  %v56_v10 = vsub.s32 1, %v51_v53  ;;  %s567_s13 = sshll.u32 %s817_s2, 4  ;;  %s568_s13 = int_to_ptr.vmem [resolvable:$true] %s567_s13 }
  0x3b   :  { %s783_s14 = scalar_lea.vmem %s568_s13, 1536  ;;  %p788_p3 = scmp.lt.s32.totalorder %s568_s13, %s568_s13 }
  0x3c   :  { %641 = vmatpush3.bf16.msra.mxu1 %v713_v25  ;;  %v61_v57 = vrot.slane %v48_v55, %v60_v54  ;;  %v53_v11 = vrot.slane %v48_v55, %v52_v8  ;;  %v57_v12 = vrot.slane %v48_v55, %v56_v10  ;;  %p784_p2 = scmp.ne.s32.totalorder %s568_s13, %s783_s14  ;;  %p789_p4 = scmp.lt.s32.totalorder %s783_s14, %s783_s14 }
  0x3d   :  { %447 = vmatpush1.bf16.msra.mxu0 %v686_v16  ;;  %642 = vmatprep.subr.bf16.mxu1 %v715_v26 }
  0x3e   :  { %448 = vmatprep.subr.bf16.mxu0 %v687_v18  ;;  %p790_p5 = por %p789_p4, %p788_p3 }
  0x40   :  { %643 = vmatpush3.bf16.msra.mxu1 %v718_v29  ;;  %p791_p6 = pnand %p790_p5, %p784_p2 }
  0x41   :  { %449 = vmatpush1.bf16.msra.mxu0 %v689_v20  ;;  %644 = vmatprep.subr.bf16.mxu1 %v720_v30 }
  0x42   :  { %450 = vmatprep.subr.bf16.mxu0 %v691_v23 }
  0x44   :  { %645 = vmatpush3.bf16.msra.mxu1 %v723_v32 }
  0x45   :  { %451 = vmatpush1.bf16.msra.mxu0 %v694_v24  ;;  %646 = vmatprep.subr.bf16.mxu1 %v725_v34 }
  0x46   :  { %452 = vmatprep.subr.bf16.mxu0 %v696_v27 }
  0x48   :  { %647 = vmatpush3.bf16.msra.mxu1 %v728_v37 }
  0x49   :  { %453 = vmatpush1.bf16.msra.mxu0 %v699_v28 }
  0x4a   :  { %454 = vmatprep.subr.bf16.mxu0 %v701_v31 }
  0x4b   :  { %522 = vmatmul.mubr.bf16.vlgmr.msra.gmra.mrb[0].mxu1 %v730_v40 }
  0x4c   :  { %529 = vmatprep.mubr.bf16.mxu1 %v736_v41 }
  0x4d   :  { %455 = vmatpush1.bf16.msra.mxu0 %v704_v33 }
  0x4e   :  { %456 = vmatprep.subr.bf16.mxu0 %v706_v35 }
  0x51   :  { %457 = vmatpush1.bf16.msra.mxu0 %v709_v38 }
  0x52   :  { %458 = vmatprep.subr.bf16.mxu0 %v711_v39 }
  0x53   :  { %530 = vmatmul.mubr.bf16.gmra.mrb[4].mxu1 %v738_v46 }
  0x55   :  { %459 = vmatpush1.bf16.msra.mxu0 %v714_v42 }
  0x56   :  { %460 = vmatprep.subr.bf16.mxu0 %v716_v43 }
  0x59   :  { %461 = vmatpush1.bf16.msra.mxu0 %v719_v44 }
  0x5a   :  { %462 = vmatprep.subr.bf16.mxu0 %v721_v45 }
  0x5d   :  { %463 = vmatpush1.bf16.msra.mxu0 %v724_v47 }
  0x5e   :  { %464 = vmatprep.subr.bf16.mxu0 %v726_v48 }
  0x61   :  { %465 = vmatpush1.bf16.msra.mxu0 %v729_v49 }
  0x62   :  { %466 = vmatprep.subr.bf16.mxu0 %v733_v50 }
  0x65   :  { %467 = vmatpush1.bf16.msra.mxu0 %v735_v51 }
  0x68   :  { %469 = vmatmul.mubr.bf16.vlgmr.msra.gmra.mrb[0].mxu0 %v730_v40 }
  0x69   :  { %478 = vmatprep.mubr.bf16.mxu0 %v736_v41 }
  0x70   :  { %479 = vmatmul.mubr.bf16.gmra.mrb[4].mxu0 %v738_v46 }
 0x11e   :  { %v648_v56 = vpop.f32.mrb[0].mxu1 }
 0x11f   :  { %v649_v58 = vpop.f32.mrb[1].mxu1 }
 0x120   :  { %v650_v59 = vadd.f32 %v649_v58, %v648_v56  ;;  %v651_v60 = vpop.f32.mrb[2].mxu1 }
 0x121   :  { %v652_v61 = vpop.f32.mrb[3].mxu1 }
 0x122   :  { %v540_v62 = vadd.f32 %v650_v59, %v61_v57  ;;  %v653_v63 = vadd.f32 %v652_v61, %v651_v60 }
 0x124   :  { %552 = vst [vmem:[#allocation7 + $0x10] sm:$0xff] %v540_v62  ;;  %v543_v0 = vadd.f32 %v653_v63, %v61_v57 }
 0x126   :  { %555 = vst [vmem:[#allocation7 + $0x28] sm:$0xff] %v543_v0  ;;  %v654_v1 = vpop.f32.mrb[4].mxu1 }
 0x127   :  { %v655_v2 = vpop.f32.mrb[5].mxu1 }
 0x128   :  { %v656_v3 = vadd.f32 %v655_v2, %v654_v1  ;;  %v657_v4 = vpop.f32.mrb[6].mxu1 }
 0x129   :  { %v658_v5 = vpop.f32.mrb[7].mxu1 }
 0x12a   :  { %v546_v6 = vadd.f32 %v656_v3, %v61_v57  ;;  %v659_v7 = vadd.f32 %v658_v5, %v657_v4 }
 0x12c   :  { %558 = vst [vmem:[#allocation7 + $0x40] sm:$0xff] %v546_v6  ;;  %v549_v9 = vadd.f32 %v659_v7, %v61_v57 }
 0x12e   :  { %561 = vst [vmem:[#allocation7 + $0x58] sm:$0xff] %v549_v9 }
 0x13b   :  { %v470_v13 = vpop.f32.mrb[0].mxu0 }
 0x13c   :  { %v538_v14 = vadd.f32 %v470_v13, %v53_v11  ;;  %v472_v15 = vpop.f32.mrb[1].mxu0 }
 0x13d   :  { %v539_v16 = vadd.f32 %v472_v15, %v57_v12  ;;  %v474_v17 = vpop.f32.mrb[2].mxu0 }
 0x13e   :  { %550 = vst [vmem:[#allocation7] sm:$0xff] %v538_v14  ;;  %v541_v18 = vadd.f32 %v474_v17, %v53_v11  ;;  %v476_v19 = vpop.f32.mrb[3].mxu0 }
 0x13f   :  { %551 = vst [vmem:[#allocation7 + $0x8] sm:$0xff] %v539_v16  ;;  %v542_v20 = vadd.f32 %v476_v19, %v57_v12 }
 0x140   :  { %553 = vst [vmem:[#allocation7 + $0x18] sm:$0xff] %v541_v18 }
 0x141   :  { %554 = vst [vmem:[#allocation7 + $0x20] sm:$0xff] %v542_v20 }
 0x143   :  { %v480_v21 = vpop.f32.mrb[4].mxu0 }
 0x144   :  { %v544_v22 = vadd.f32 %v480_v21, %v53_v11  ;;  %v482_v23 = vpop.f32.mrb[5].mxu0 }
 0x145   :  { %v545_v24 = vadd.f32 %v482_v23, %v57_v12  ;;  %v484_v25 = vpop.f32.mrb[6].mxu0 }
 0x146   :  { %556 = vst [vmem:[#allocation7 + $0x30] sm:$0xff] %v544_v22  ;;  %v547_v26 = vadd.f32 %v484_v25, %v53_v11  ;;  %v486_v27 = vpop.f32.mrb[7].mxu0 }
 0x147   :  { %557 = vst [vmem:[#allocation7 + $0x38] sm:$0xff] %v545_v24  ;;  %v548_v28 = vadd.f32 %v486_v27, %v57_v12 }
 0x148   :  { %559 = vst [vmem:[#allocation7 + $0x48] sm:$0xff] %v547_v26 }
 0x149   :  { %560 = vst [vmem:[#allocation7 + $0x50] sm:$0xff] %v548_v28 }
 0x14a   :  { %794 = shalt.err (!%p791_p6)
}
 0x14b   :  { %s795_s17 = scalar_lea.hbm %s882_s3, 1536 }
 0x14c   :  { %p796_p7 = scmp.ne.s32.totalorder %s882_s3, %s795_s17  ;;  %p799_p8 = scmp.lt.u32.totalorder %s795_s17, %s882_s3 }
 0x14e   :  { %p801_p9 = pnand %p799_p8, %p796_p7 }
 0x150   :  { %804 = shalt.err (!%p801_p9)
}
 0x151   :  { %s818_s22 = smov 384   ;;  %s819_s23 = smov 24  }
 0x152   :  { %573 = dma.vmem_to_hbm [thread:$0]  %s568_s13, 1536, %s882_s3, [#allocation4], %s818_s22, %s818_s22, %s819_s23  }
 0x153   :  { %809 = dma.done.wait [#allocation4], 1536  }
 0x154   :  { %810 = vsyncadd [#allocation4], 4294965760 }
 0x155   :  { %577 = vsyncpa [#allocation3], 1 }
 0x156   :  { %578 = vsyncpa [#allocation6], 1 }
 0x157   :  { %579 = vsyncpa [#allocation4], 1 }

</bundles_post_ra>
